<compile_context>
chip_gen: v6e
topology: v6e:2x2x1
jax: 0.10.0
libtpu: 0.0.40
codegen_flags: <defaults>
</compile_context>

<pallas_src>
import jax
import jax.numpy as jnp
from jax.experimental import pallas as pl
from jax.experimental.pallas import tpu as pltpu

IMAGE_SIZE = 28 * 28          # 784
HIDDEN_SIZE = 256


def _round_up(n, m):
    return ((n + m - 1) // m) * m


def _disc_kernel(x_ref, w1_ref, b1_ref, w2_ref, b2_ref, w3_ref, b3_ref, o_ref):
    # Layer 1: bf16 MXU matmul, f32 accumulation.
    x = x_ref[...].astype(jnp.bfloat16)                                  # (bm, 784)
    h1 = jnp.dot(x, w1_ref[...], preferred_element_type=jnp.float32)     # (bm, 256) f32
    h1 = jnp.maximum(h1 + b1_ref[...], 0.0)                              # ReLU (f32)

    # Layer 2: bf16 MXU matmul, f32 accumulation.
    h2 = jnp.dot(h1.astype(jnp.bfloat16), w2_ref[...],
                 preferred_element_type=jnp.float32)                     # (bm, 256) f32
    h2 = jnp.maximum(h2 + b2_ref[...], 0.0)                              # ReLU (f32)

    # Layer 3 (out_features = 1): keep it off the MXU.
    # VPU broadcast multiply + lane (XLU) reduction, bias read from SMEM.
    logits = jnp.sum(h2 * w3_ref[...], axis=-1, keepdims=True)           # (bm, 1)
    logits = logits + b3_ref[0, 0]
    o_ref[...] = jax.nn.sigmoid(logits).astype(o_ref.dtype)


def discriminator_forward(x, params, *, block_b=None):
    """x: (B, 784) float32.  params: dict of (in,out) weights + (1,out) biases."""
    B, D = x.shape
    assert D == IMAGE_SIZE

    # Fixed, VMEM-safe batch tile (multiple of 8 sublanes, <=512 rows by default).
    if block_b is None:
        block_b = min(512, _round_up(B, 8))
    block_b = max(8, _round_up(block_b, 8))

    # Pad batch so the grid divides evenly; padded rows are sliced off afterwards.
    B_pad = _round_up(B, block_b)
    if B_pad != B:
        x = jnp.pad(x, ((0, B_pad - B), (0, 0)))
    num_tiles = B_pad // block_b

    # Weights in bf16 for the MXU (f32 accumulation keeps accuracy); small
    # per-feature tensors stay f32.  w3 is presented as a (1, 256) row so the
    # final layer can be a VPU multiply + lane reduce instead of an N=1 matmul.
    w1 = params["w1"].astype(jnp.bfloat16)
    w2 = params["w2"].astype(jnp.bfloat16)
    b1 = params["b1"].astype(jnp.float32)
    b2 = params["b2"].astype(jnp.float32)
    w3 = params["w3"].reshape(1, HIDDEN_SIZE).astype(jnp.float32)
    b3 = params["b3"].reshape(1, 1).astype(jnp.float32)

    out = pl.pallas_call(
        _disc_kernel,
        out_shape=jax.ShapeDtypeStruct((B_pad, 1), jnp.float32),
        grid_spec=pltpu.PrefetchScalarGridSpec(
            num_scalar_prefetch=0,
            grid=(num_tiles,),
            in_specs=[
                pl.BlockSpec((block_b, IMAGE_SIZE), lambda i: (i, 0)),       # x tile
                pl.BlockSpec((IMAGE_SIZE, HIDDEN_SIZE), lambda i: (0, 0)),   # W1 (bf16)
                pl.BlockSpec((1, HIDDEN_SIZE), lambda i: (0, 0)),            # b1
                pl.BlockSpec((HIDDEN_SIZE, HIDDEN_SIZE), lambda i: (0, 0)),  # W2 (bf16)
                pl.BlockSpec((1, HIDDEN_SIZE), lambda i: (0, 0)),            # b2
                pl.BlockSpec((1, HIDDEN_SIZE), lambda i: (0, 0)),            # W3 row
                pl.BlockSpec(memory_space=pltpu.MemorySpace.SMEM),           # b3 scalar
            ],
            out_specs=pl.BlockSpec((block_b, 1), lambda i: (i, 0)),
        ),
        compiler_params=pltpu.CompilerParams(
            dimension_semantics=("parallel",)),
    )(x, w1, b1, w2, b2, w3, b3)

    return out[:B]


def init_params(key):
    """Deterministic init mimicking nn.Linear's U(-1/sqrt(fan_in), 1/sqrt(fan_in)).
    Weights are stored as (in, out) = W.T so the kernel does x @ W."""
    ks = jax.random.split(key, 6)

    def lin(kw, kb, fan_in, fan_out):
        bound = 1.0 / jnp.sqrt(fan_in)
        w = jax.random.uniform(kw, (fan_in, fan_out), jnp.float32, -bound, bound)
        b = jax.random.uniform(kb, (1, fan_out), jnp.float32, -bound, bound)
        return w, b

    w1, b1 = lin(ks[0], ks[1], IMAGE_SIZE, HIDDEN_SIZE)
    w2, b2 = lin(ks[2], ks[3], HIDDEN_SIZE, HIDDEN_SIZE)
    w3, b3 = lin(ks[4], ks[5], HIDDEN_SIZE, 1)
    return {"w1": w1, "b1": b1, "w2": w2, "b2": b2, "w3": w3, "b3": b3}


def _reference_f32(x, p):
    """Pure-f32 reference (PyTorch semantics)."""
    h1 = jnp.maximum(x @ p["w1"] + p["b1"], 0.0)
    h2 = jnp.maximum(h1 @ p["w2"] + p["b2"], 0.0)
    return jax.nn.sigmoid(h2 @ p["w3"] + p["b3"])


def _reference_bf16(x, p):
    """Reference with the same bf16-operand / f32-accumulate precision as the kernel."""
    w1 = p["w1"].astype(jnp.bfloat16)
    w2 = p["w2"].astype(jnp.bfloat16)
    h1 = jnp.dot(x.astype(jnp.bfloat16), w1, preferred_element_type=jnp.float32) + p["b1"]
    h1 = jnp.maximum(h1, 0.0)
    h2 = jnp.dot(h1.astype(jnp.bfloat16), w2, preferred_element_type=jnp.float32) + p["b2"]
    h2 = jnp.maximum(h2, 0.0)
    logits = jnp.sum(h2 * p["w3"].reshape(1, -1), axis=-1, keepdims=True) + p["b3"].reshape(1, 1)
    return jax.nn.sigmoid(logits)


if __name__ == "__main__":
    key = jax.random.PRNGKey(0)
    k_param, k_x = jax.random.split(key)

    B = 8
    x = jax.random.normal(k_x, (B, IMAGE_SIZE), jnp.float32)
    params = init_params(k_param)

    out = discriminator_forward(x, params)
    out = jax.block_until_ready(out)
    assert out.shape == (B, 1)

    ref_matched = _reference_bf16(x, params)
    ref_f32 = _reference_f32(x, params)
    assert jnp.allclose(out, ref_matched, atol=2e-3, rtol=2e-3), \
        "mismatch vs matched-precision JAX reference"
    assert jnp.allclose(out, ref_f32, atol=2e-2), \
        "mismatch vs float32 (PyTorch-semantics) reference"

    print("KERNEL_OK")
</pallas_src>

<mosaic_0001>
module attributes {stable_mosaic.version = 11 : i64} {
  func.func @_disc_kernel(%arg0: i32, %arg1: memref<8x784xf32, #tpu.memory_space<vmem>>, %arg2: memref<784x256xbf16, #tpu.memory_space<vmem>>, %arg3: memref<1x256xf32, #tpu.memory_space<vmem>>, %arg4: memref<256x256xbf16, #tpu.memory_space<vmem>>, %arg5: memref<1x256xf32, #tpu.memory_space<vmem>>, %arg6: memref<1x256xf32, #tpu.memory_space<vmem>>, %arg7: memref<1x1xf32, #tpu.memory_space<smem>>, %arg8: memref<8x1xf32, #tpu.memory_space<vmem>>) attributes {dimension_semantics = [#tpu.dimension_semantics<parallel>], iteration_bounds = array<i64: 1>, scalar_prefetch = 0 : i64, scratch_operands = 0 : i64, tpu.core_type = #tpu.core_type<tc>, window_params = [{transform_indices = @transform_0, window_bounds = array<i64: 8, 784>}, {pipeline_mode = #tpu.pipeline_mode<synchronous>, transform_indices = @transform_1, window_bounds = array<i64: 784, 256>}, {pipeline_mode = #tpu.pipeline_mode<synchronous>, transform_indices = @transform_2, window_bounds = array<i64: 1, 256>}, {pipeline_mode = #tpu.pipeline_mode<synchronous>, transform_indices = @transform_3, window_bounds = array<i64: 256, 256>}, {pipeline_mode = #tpu.pipeline_mode<synchronous>, transform_indices = @transform_4, window_bounds = array<i64: 1, 256>}, {pipeline_mode = #tpu.pipeline_mode<synchronous>, transform_indices = @transform_5, window_bounds = array<i64: 1, 256>}, {transform_indices = @transform_6, window_bounds = array<i64: 1, 1>}, {transform_indices = @transform_7, window_bounds = array<i64: 8, 1>}]} {
    %c0 = arith.constant 0 : index
    %c0_0 = arith.constant 0 : index
    %0 = vector.load %arg1[%c0, %c0_0] : memref<8x784xf32, #tpu.memory_space<vmem>>, vector<8x784xf32>
    %1 = arith.truncf %0 : vector<8x784xf32> to vector<8x784xbf16>
    %c0_1 = arith.constant 0 : index
    %c0_2 = arith.constant 0 : index
    %2 = vector.load %arg2[%c0_1, %c0_2] : memref<784x256xbf16, #tpu.memory_space<vmem>>, vector<784x256xbf16>
    %cst = arith.constant dense<0.000000e+00> : vector<8x256xf32>
    %3 = tpu.matmul %1, %2, %cst {dimension_numbers = #tpu.dot_dimension_numbers<[1], [0], [0], [1], [0, 0, 1, 1], [], []>} : vector<8x784xbf16>, vector<784x256xbf16>, vector<8x256xf32> -> vector<8x256xf32>
    %c0_3 = arith.constant 0 : index
    %c0_4 = arith.constant 0 : index
    %4 = vector.load %arg3[%c0_3, %c0_4] : memref<1x256xf32, #tpu.memory_space<vmem>>, vector<1x256xf32>
    %5 = vector.broadcast %4 : vector<1x256xf32> to vector<8x256xf32>
    %6 = arith.addf %3, %5 : vector<8x256xf32>
    %cst_5 = arith.constant 0.000000e+00 : f32
    %7 = vector.broadcast %cst_5 : f32 to vector<8x256xf32>
    %8 = arith.maximumf %6, %7 : vector<8x256xf32>
    %9 = arith.truncf %8 : vector<8x256xf32> to vector<8x256xbf16>
    %c0_6 = arith.constant 0 : index
    %c0_7 = arith.constant 0 : index
    %10 = vector.load %arg4[%c0_6, %c0_7] : memref<256x256xbf16, #tpu.memory_space<vmem>>, vector<256x256xbf16>
    %cst_8 = arith.constant dense<0.000000e+00> : vector<8x256xf32>
    %11 = tpu.matmul %9, %10, %cst_8 {dimension_numbers = #tpu.dot_dimension_numbers<[1], [0], [0], [1], [0, 0, 1, 1], [], []>} : vector<8x256xbf16>, vector<256x256xbf16>, vector<8x256xf32> -> vector<8x256xf32>
    %c0_9 = arith.constant 0 : index
    %c0_10 = arith.constant 0 : index
    %12 = vector.load %arg5[%c0_9, %c0_10] : memref<1x256xf32, #tpu.memory_space<vmem>>, vector<1x256xf32>
    %13 = vector.broadcast %12 : vector<1x256xf32> to vector<8x256xf32>
    %14 = arith.addf %11, %13 : vector<8x256xf32>
    %cst_11 = arith.constant 0.000000e+00 : f32
    %15 = vector.broadcast %cst_11 : f32 to vector<8x256xf32>
    %16 = arith.maximumf %14, %15 : vector<8x256xf32>
    %c0_12 = arith.constant 0 : index
    %c0_13 = arith.constant 0 : index
    %17 = vector.load %arg6[%c0_12, %c0_13] : memref<1x256xf32, #tpu.memory_space<vmem>>, vector<1x256xf32>
    %18 = vector.broadcast %17 : vector<1x256xf32> to vector<8x256xf32>
    %19 = arith.mulf %16, %18 : vector<8x256xf32>
    %cst_14 = arith.constant dense<0.000000e+00> : vector<8xf32>
    %20 = vector.multi_reduction <add>, %19, %cst_14 [1] : vector<8x256xf32> to vector<8xf32>
    %21 = vector.shape_cast %20 : vector<8xf32> to vector<8x1xf32>
    %c0_15 = arith.constant 0 : index
    %c0_16 = arith.constant 0 : index
    %22 = memref.load %arg7[%c0_15, %c0_16] : memref<1x1xf32, #tpu.memory_space<smem>>
    %23 = vector.broadcast %22 : f32 to vector<8x1xf32>
    %24 = arith.addf %21, %23 : vector<8x1xf32>
    %25 = arith.negf %24 : vector<8x1xf32>
    %26 = math.exp %25 : vector<8x1xf32>
    %cst_17 = arith.constant 1.000000e+00 : f32
    %27 = vector.broadcast %cst_17 : f32 to vector<8x1xf32>
    %28 = arith.addf %27, %26 : vector<8x1xf32>
    %29 = arith.divf %27, %28 : vector<8x1xf32>
    %c0_18 = arith.constant 0 : index
    %c0_19 = arith.constant 0 : index
    %30 = vector.load %arg8[%c0_18, %c0_19] : memref<8x1xf32, #tpu.memory_space<vmem>>, vector<8x1xf32>
    tpu.vector_store %arg8[%c0_18, %c0_19], %29 {strides = array<i32>} : memref<8x1xf32, #tpu.memory_space<vmem>>, vector<8x1xf32>,
    return
  }
  func.func @transform_0(%arg0: i32) -> (i32, i32) {
    %c0_i32 = arith.constant 0 : i32
    %c0_i32_0 = arith.constant 0 : i32
    return %arg0, %c0_i32 : i32, i32
  }
  func.func @transform_1(%arg0: i32) -> (i32, i32) {
    %c0_i32 = arith.constant 0 : i32
    %c0_i32_0 = arith.constant 0 : i32
    %c0_i32_1 = arith.constant 0 : i32
    return %c0_i32, %c0_i32_0 : i32, i32
  }
  func.func @transform_2(%arg0: i32) -> (i32, i32) {
    %c0_i32 = arith.constant 0 : i32
    %c0_i32_0 = arith.constant 0 : i32
    %c0_i32_1 = arith.constant 0 : i32
    return %c0_i32, %c0_i32_0 : i32, i32
  }
  func.func @transform_3(%arg0: i32) -> (i32, i32) {
    %c0_i32 = arith.constant 0 : i32
    %c0_i32_0 = arith.constant 0 : i32
    %c0_i32_1 = arith.constant 0 : i32
    return %c0_i32, %c0_i32_0 : i32, i32
  }
  func.func @transform_4(%arg0: i32) -> (i32, i32) {
    %c0_i32 = arith.constant 0 : i32
    %c0_i32_0 = arith.constant 0 : i32
    %c0_i32_1 = arith.constant 0 : i32
    return %c0_i32, %c0_i32_0 : i32, i32
  }
  func.func @transform_5(%arg0: i32) -> (i32, i32) {
    %c0_i32 = arith.constant 0 : i32
    %c0_i32_0 = arith.constant 0 : i32
    %c0_i32_1 = arith.constant 0 : i32
    return %c0_i32, %c0_i32_0 : i32, i32
  }
  func.func @transform_6(%arg0: i32) -> (i32, i32) {
    %c0_i32 = arith.constant 0 : i32
    %c0_i32_0 = arith.constant 0 : i32
    %c0_i32_1 = arith.constant 0 : i32
    return %c0_i32, %c0_i32_0 : i32, i32
  }
  func.func @transform_7(%arg0: i32) -> (i32, i32) {
    %c0_i32 = arith.constant 0 : i32
    %c0_i32_0 = arith.constant 0 : i32
    return %arg0, %c0_i32 : i32, i32
  }
}

</mosaic_0001>

<bundles_post_ra>
// kernel: tpu_custom_call.1
= control target key start
LH: loop header
LB: loop body
LE: loop exit
PB: predicated region body
PF: predicated region fallthrough
CT: control target
= control target key end

     0   :  { %13 = vsyncpa [#allocation4], 0  ;;  %s1605_s0 = inlined_call_operand.hbm [shape: f32[8,784], index: 0, kind: input, shape index: {}]   ;;  %s1606_s1 = inlined_call_operand.hbm [shape: bf16[784,256], index: 1, kind: input, shape index: {}]   ;;  %s1607_s2 = inlined_call_operand.vmem [shape: f32[1,256], index: 2, kind: input, shape index: {}]   ;;  %s1608_s3 = inlined_call_operand.hbm [shape: bf16[256,256], index: 3, kind: input, shape index: {}]   ;;  %s1609_s4 = inlined_call_operand.vmem [shape: f32[1,256], index: 4, kind: input, shape index: {}]   ;;  %s1610_s5 = inlined_call_operand.vmem [shape: f32[1,256], index: 5, kind: input, shape index: {}]   ;;  %s1611_s6 = inlined_call_operand.<no memory space> [shape: f32[1,1], index: 6, kind: input, shape index: {}]   ;;  %s1612_s7 = inlined_call_operand.vmem [shape: f32[8,1], index: 7, kind: output, shape index: {}]  }
   0x1   :  { %14 = vsyncpa [#allocation6], 0  ;;  %s1535_s24 = smov [#allocation5]  }
   0x2   :  { %s30_s25 = sshll.u32 %s1535_s24, 4  ;;  %s31_s25 = int_to_ptr.vmem [resolvable:$true] %s30_s25 }
   0x3   :  { %s1479_s26 = scalar_lea.vmem %s31_s25, 12544  ;;  %p1484_p1 = scmp.lt.s32.totalorder %s31_s25, %s31_s25 }
   0x4   :  { %p1480_p0 = scmp.ne.s32.totalorder %s31_s25, %s1479_s26  ;;  %p1485_p2 = scmp.lt.s32.totalorder %s1479_s26, %s1479_s26 }
   0x6   :  { %p1486_p3 = por %p1485_p2, %p1484_p1 }
   0x8   :  { %p1487_p4 = pnand %p1486_p3, %p1480_p0 }
   0xa   :  { %1490 = shalt.err (!%p1487_p4)
}
   0xb   :  { %s1536_s27 = smov 128   ;;  %s1537_s28 = smov 8  }
   0xc   :  { %36 = dma.hbm_to_vmem [thread:$0]  %s1606_s1, 12544, %s31_s25, [#allocation6], %s1536_s27, %s1536_s27, %s1537_s28  }
   0xd   :  { %s1538_s8 = smov [#allocation3]   ;;  %s1539_s10 = smov [#allocation7]  }
   0xe   :  { %s21_s9 = sshll.u32 %s1538_s8, 4  ;;  %s44_s11 = sshll.u32 %s1539_s10, 4  ;;  %s22_s9 = int_to_ptr.vmem [resolvable:$true] %s21_s9  ;;  %s45_s11 = int_to_ptr.vmem [resolvable:$true] %s44_s11 }
   0xf   :  { %s1499_s12 = scalar_lea.vmem %s22_s9, 896  ;;  %p1504_p6 = scmp.lt.s32.totalorder %s22_s9, %s22_s9 }
  0x10   :  { %p1500_p5 = scmp.ne.s32.totalorder %s22_s9, %s1499_s12  ;;  %p1505_p7 = scmp.lt.s32.totalorder %s1499_s12, %s1499_s12 }
  0x12   :  { %p1506_p8 = por %p1505_p7, %p1504_p6 }
  0x14   :  { %p1507_p9 = pnand %p1506_p8, %p1500_p5 }
  0x16   :  { %1510 = shalt.err (!%p1507_p9)
}
  0x17   :  { %24 = dma.hbm_to_vmem [thread:$0]  %s1605_s0, 896, %s22_s9, [#allocation4]  }
  0x18   :  { %s1519_s15 = scalar_lea.vmem %s45_s11, 4096  ;;  %p1524_p11 = scmp.lt.s32.totalorder %s45_s11, %s45_s11 }
  0x19   :  { %p1520_p10 = scmp.ne.s32.totalorder %s45_s11, %s1519_s15  ;;  %p1525_p12 = scmp.lt.s32.totalorder %s1519_s15, %s1519_s15 }
  0x1b   :  { %p1526_p13 = por %p1525_p12, %p1524_p11 }
  0x1d   :  { %p1527_p0 = pnand %p1526_p13, %p1520_p10 }
  0x1f   :  { %1530 = shalt.err (!%p1527_p0)
}
  0x20   :  { %50 = dma.hbm_to_vmem [thread:$0]  %s1608_s3, 4096, %s45_s11, [#allocation6], %s1536_s27, %s1536_s27, %s1537_s28  }
  0x21   :  { %1531 = dma.done.wait [#allocation4], 896  }
  0x22   :  { %1532 = vsyncadd [#allocation4], 4294966400 }
  0x23   :  { %1533 = dma.done.wait [#allocation6], 16640  }
  0x24   :  { %1534 = vsyncadd [#allocation6], 4294950656  ;;  %v1272_v0 = vld [vmem:[#allocation5 + $0x74] ss:$8 sps:$4 sm:$0xff]   ;;  %v1274_v1 = vld [vmem:[#allocation5 + $0x70] ss:$8 sps:$4 sm:$0xff]  }
  0x25   :  { %685 = vmatprep.subr.bf16.mxu0 %v1272_v0  ;;  %v1275_v2 = vld [vmem:[#allocation5 + $0x174] ss:$8 sps:$4 sm:$0xff]   ;;  %v1277_v3 = vld [vmem:[#allocation5 + $0x170] ss:$8 sps:$4 sm:$0xff]   ;;  %v1278_v4 = vld [vmem:[#allocation5 + $0x64] ss:$8 sps:$4 sm:$0xff]  }
  0x26   :  { %686 = vmatpush1.bf16.msra.mxu0 %v1274_v1  ;;  %v1280_v5 = vld [vmem:[#allocation5 + $0x60] ss:$8 sps:$4 sm:$0xff]   ;;  %726 = vmatprep.subr.bf16.mxu1 %v1275_v2  ;;  %v1281_v6 = vld [vmem:[#allocation5 + $0x164] ss:$8 sps:$4 sm:$0xff]   ;;  %v1284_v8 = vld [vmem:[#allocation5 + $0x54] ss:$8 sps:$4 sm:$0xff]  }
  0x27   :  { %727 = vmatpush1.bf16.msra.mxu1 %v1277_v3  ;;  %687 = vmatprep.subr.bf16.mxu0 %v1278_v4  ;;  %v1283_v7 = vld [vmem:[#allocation5 + $0x160] ss:$8 sps:$4 sm:$0xff]   ;;  %v1286_v9 = vld [vmem:[#allocation5 + $0x50] ss:$8 sps:$4 sm:$0xff]   ;;  %v1287_v10 = vld [vmem:[#allocation5 + $0x154] ss:$8 sps:$4 sm:$0xff]  }
  0x28   :  { %728 = vmatprep.subr.bf16.mxu1 %v1281_v6  ;;  %v1290_v11 = vld [vmem:[#allocation5 + $0x44] ss:$8 sps:$4 sm:$0xff]   ;;  %v1289_v12 = vld [vmem:[#allocation5 + $0x150] ss:$8 sps:$4 sm:$0xff]   ;;  %v1292_v14 = vld [vmem:[#allocation5 + $0x40] ss:$8 sps:$4 sm:$0xff]  }
  0x29   :  { %v1293_v13 = vld [vmem:[#allocation5 + $0x144] ss:$8 sps:$4 sm:$0xff]   ;;  %v1296_v15 = vld [vmem:[#allocation5 + $0x34] ss:$8 sps:$4 sm:$0xff]   ;;  %v1295_v16 = vld [vmem:[#allocation5 + $0x140] ss:$8 sps:$4 sm:$0xff]  }
  0x2a   :  { %688 = vmatpush1.bf16.msra.mxu0 %v1280_v5  ;;  %v1299_v17 = vld [vmem:[#allocation5 + $0x134] ss:$8 sps:$4 sm:$0xff]   ;;  %v1298_v18 = vld [vmem:[#allocation5 + $0x30] ss:$8 sps:$4 sm:$0xff]   ;;  %v1302_v19 = vld [vmem:[#allocation5 + $0x24] ss:$8 sps:$4 sm:$0xff]  }
  0x2b   :  { %689 = vmatprep.subr.bf16.mxu0 %v1284_v8  ;;  %729 = vmatpush1.bf16.msra.mxu1 %v1283_v7  ;;  %v1301_v20 = vld [vmem:[#allocation5 + $0x130] ss:$8 sps:$4 sm:$0xff]   ;;  %v1305_v21 = vld [vmem:[#allocation5 + $0x124] ss:$8 sps:$4 sm:$0xff]   ;;  %v1304_v22 = vld [vmem:[#allocation5 + $0x20] ss:$8 sps:$4 sm:$0xff]  }
  0x2c   :  { %730 = vmatprep.subr.bf16.mxu1 %v1287_v10  ;;  %v1308_v23 = vld [vmem:[#allocation5 + $0x14] ss:$8 sps:$4 sm:$0xff]   ;;  %v1307_v24 = vld [vmem:[#allocation5 + $0x120] ss:$8 sps:$4 sm:$0xff]   ;;  %v1310_v26 = vld [vmem:[#allocation5 + $0x10] ss:$8 sps:$4 sm:$0xff]  }
  0x2d   :  { %v1311_v25 = vld [vmem:[#allocation5 + $0x114] ss:$8 sps:$4 sm:$0xff]   ;;  %v1314_v27 = vld [vmem:[#allocation5 + $0x4] ss:$8 sps:$4 sm:$0xff]   ;;  %v1313_v28 = vld [vmem:[#allocation5 + $0x110] ss:$8 sps:$4 sm:$0xff]  }
  0x2e   :  { %690 = vmatpush1.bf16.msra.mxu0 %v1286_v9  ;;  %v1317_v29 = vld [vmem:[#allocation5 + $0x104] ss:$8 sps:$4 sm:$0xff]   ;;  %v1316_v30 = vld [vmem:[#allocation5] ss:$8 sps:$4 sm:$0xff]   ;;  %v1320_v31 = vld [vmem:[#allocation5 + $0xf4] ss:$8 sps:$4 sm:$0xff]  }
  0x2f   :  { %691 = vmatprep.subr.bf16.mxu0 %v1290_v11  ;;  %731 = vmatpush1.bf16.msra.mxu1 %v1289_v12  ;;  %v1319_v32 = vld [vmem:[#allocation5 + $0x100] ss:$8 sps:$4 sm:$0xff]   ;;  %v1323_v33 = vld [vmem:[#allocation5 + $0x1f4] ss:$8 sps:$4 sm:$0xff]   ;;  %v1322_v34 = vld [vmem:[#allocation5 + $0xf0] ss:$8 sps:$4 sm:$0xff]  }
  0x30   :  { %732 = vmatprep.subr.bf16.mxu1 %v1293_v13  ;;  %v1326_v35 = vld [vmem:[#allocation5 + $0xe4] ss:$8 sps:$4 sm:$0xff]   ;;  %v1325_v36 = vld [vmem:[#allocation5 + $0x1f0] ss:$8 sps:$4 sm:$0xff]   ;;  %v1328_v38 = vld [vmem:[#allocation5 + $0xe0] ss:$8 sps:$4 sm:$0xff]  }
  0x31   :  { %v1329_v37 = vld [vmem:[#allocation5 + $0x1e4] ss:$8 sps:$4 sm:$0xff]   ;;  %v1332_v39 = vld [vmem:[#allocation5 + $0xd4] ss:$8 sps:$4 sm:$0xff]   ;;  %v1331_v40 = vld [vmem:[#allocation5 + $0x1e0] ss:$8 sps:$4 sm:$0xff]  }
  0x32   :  { %692 = vmatpush1.bf16.msra.mxu0 %v1292_v14  ;;  %v1335_v41 = vld [vmem:[#allocation5 + $0x1d4] ss:$8 sps:$4 sm:$0xff]   ;;  %v1334_v42 = vld [vmem:[#allocation5 + $0xd0] ss:$8 sps:$4 sm:$0xff]   ;;  %v1338_v43 = vld [vmem:[#allocation5 + $0xc4] ss:$8 sps:$4 sm:$0xff]  }
  0x33   :  { %693 = vmatprep.subr.bf16.mxu0 %v1296_v15  ;;  %733 = vmatpush1.bf16.msra.mxu1 %v1295_v16  ;;  %v1337_v44 = vld [vmem:[#allocation5 + $0x1d0] ss:$8 sps:$4 sm:$0xff]   ;;  %v1341_v45 = vld [vmem:[#allocation5 + $0x1c4] ss:$8 sps:$4 sm:$0xff]   ;;  %v1340_v47 = vld [vmem:[#allocation5 + $0xc0] ss:$8 sps:$4 sm:$0xff]  }
  0x34   :  { %734 = vmatprep.subr.bf16.mxu1 %v1299_v17  ;;  %v68_v46 = vld [vmem:[#allocation3 + $0x8] sm:$0xff]  ;;  %v70_v50 = vld [vmem:[#allocation3 + $0x18] sm:$0xff]  ;;  %v67_v4 = vld [vmem:[#allocation3] sm:$0xff]  ;;  %vm681_vm0 = vcmask 130048   ;;  %vm1126_vm1 = vcmask 7168  }
  0x35   :  { %v75_v48 = vpack.c.bf16 %v68_v46, %v68_v46  ;;  %v1344_v49 = vld [vmem:[#allocation5 + $0xb4] ss:$8 sps:$4 sm:$0xff]   ;;  %v1343_v51 = vld [vmem:[#allocation5 + $0x1c0] ss:$8 sps:$4 sm:$0xff]   ;;  %v77_v52 = vpack.c.bf16 %v70_v50, %v70_v50  ;;  %v1346_v54 = vld [vmem:[#allocation5 + $0xb0] ss:$8 sps:$4 sm:$0xff]   ;;  %v74_v7 = vpack.c.bf16 %v67_v4, %v67_v4 }
  0x36   :  { %694 = vmatpush1.bf16.msra.mxu0 %v1298_v18  ;;  %v1347_v53 = vld [vmem:[#allocation5 + $0x1b4] ss:$8 sps:$4 sm:$0xff]   ;;  %v1350_v55 = vld [vmem:[#allocation5 + $0xa4] ss:$8 sps:$4 sm:$0xff]   ;;  %v1349_v56 = vld [vmem:[#allocation5 + $0x1b0] ss:$8 sps:$4 sm:$0xff]  }
  0x37   :  { %695 = vmatprep.subr.bf16.mxu0 %v1302_v19  ;;  %735 = vmatpush1.bf16.msra.mxu1 %v1301_v20  ;;  %v1353_v57 = vld [vmem:[#allocation5 + $0x1a4] ss:$8 sps:$4 sm:$0xff]   ;;  %v1352_v58 = vld [vmem:[#allocation5 + $0xa0] ss:$8 sps:$4 sm:$0xff]   ;;  %v1356_v59 = vld [vmem:[#allocation5 + $0x94] ss:$8 sps:$4 sm:$0xff]  }
  0x38   :  { %736 = vmatprep.subr.bf16.mxu1 %v1305_v21  ;;  %717 = vmatprep.mubr.bf16.mxu0 %v75_v48  ;;  %v1355_v60 = vld [vmem:[#allocation5 + $0x1a0] ss:$8 sps:$4 sm:$0xff]   ;;  %v1359_v61 = vld [vmem:[#allocation5 + $0x194] ss:$8 sps:$4 sm:$0xff]   ;;  %v1358_v62 = vld [vmem:[#allocation5 + $0x90] ss:$8 sps:$4 sm:$0xff]  }
  0x39   :  { %758 = vmatprep.mubr.bf16.mxu1 %v77_v52  ;;  %v1362_v63 = vld [vmem:[#allocation5 + $0x84] ss:$8 sps:$4 sm:$0xff]   ;;  %v1361_v0 = vld [vmem:[#allocation5 + $0x190] ss:$8 sps:$4 sm:$0xff]   ;;  %v1364_v1 = vld [vmem:[#allocation5 + $0x80] ss:$8 sps:$4 sm:$0xff]  }
  0x3a   :  { %696 = vmatpush1.bf16.msra.mxu0 %v1304_v22  ;;  %v1365_v2 = vld [vmem:[#allocation5 + $0x184] ss:$8 sps:$4 sm:$0xff]   ;;  %v1367_v3 = vld [vmem:[#allocation5 + $0x180] ss:$8 sps:$4 sm:$0xff]   ;;  %v1370_v5 = vld [vmem:[#allocation5 + $0x274] ss:$8 sps:$4 sm:$0xff]  }
  0x3b   :  { %697 = vmatprep.subr.bf16.mxu0 %v1308_v23  ;;  %737 = vmatpush1.bf16.msra.mxu1 %v1307_v24  ;;  %v69_v6 = vld [vmem:[#allocation3 + $0x10] sm:$0xff]  ;;  %v1373_v9 = vld [vmem:[#allocation5 + $0x264] ss:$8 sps:$4 sm:$0xff]   ;;  %v1413_v11 = vld [vmem:[#allocation5 + $0x300] ss:$8 sps:$4 sm:$0xff]   ;;  %v1540_v19 = vmov 0  }
  0x3c   :  { %738 = vmatprep.subr.bf16.mxu1 %v1311_v25  ;;  %v1368_v8 = vld [vmem:[#allocation5 + $0x270] ss:$8 sps:$4 sm:$0xff]   ;;  %v76_v10 = vpack.c.bf16 %v69_v6, %v69_v6  ;;  %v1415_v12 = vld [vmem:[#allocation5 + $0x304] ss:$8 sps:$4 sm:$0xff]   ;;  %v1371_v13 = vld [vmem:[#allocation5 + $0x260] ss:$8 sps:$4 sm:$0xff]  }
  0x3d   :  { %v1376_v14 = vld [vmem:[#allocation5 + $0x254] ss:$8 sps:$4 sm:$0xff]   ;;  %v1374_v18 = vld [vmem:[#allocation5 + $0x250] ss:$8 sps:$4 sm:$0xff]   ;;  %v1379_v20 = vld [vmem:[#allocation5 + $0x244] ss:$8 sps:$4 sm:$0xff]  }
  0x3e   :  { %698 = vmatpush1.bf16.msra.mxu0 %v1310_v26  ;;  %v73_v15 = vld [vmem:[#allocation3 + $0x30] sm:$0xff]  ;;  %v72_v16 = vld [vmem:[#allocation3 + $0x28] sm:$0xff]  ;;  %v1377_v22 = vld [vmem:[#allocation5 + $0x240] ss:$8 sps:$4 sm:$0xff]  }
  0x3f   :  { %699 = vmatprep.subr.bf16.mxu0 %v1314_v27  ;;  %739 = vmatpush1.bf16.msra.mxu1 %v1313_v28  ;;  %v79_v17 = vpack.c.bf16 %v72_v16, %v72_v16  ;;  %v80_v21 = vpack.c.bf16 %v73_v15, %v73_v15  ;;  %v1382_v23 = vld [vmem:[#allocation5 + $0x234] ss:$8 sps:$4 sm:$0xff]   ;;  %v1380_v24 = vld [vmem:[#allocation5 + $0x230] ss:$8 sps:$4 sm:$0xff]   ;;  %v1385_v25 = vld [vmem:[#allocation5 + $0x224] ss:$8 sps:$4 sm:$0xff]  }
  0x40   :  { %740 = vmatprep.subr.bf16.mxu1 %v1317_v29  ;;  %v1383_v26 = vld [vmem:[#allocation5 + $0x220] ss:$8 sps:$4 sm:$0xff]   ;;  %v1388_v27 = vld [vmem:[#allocation5 + $0x214] ss:$8 sps:$4 sm:$0xff]   ;;  %v1386_v28 = vld [vmem:[#allocation5 + $0x210] ss:$8 sps:$4 sm:$0xff]  }
  0x41   :  { %v1391_v29 = vld [vmem:[#allocation5 + $0x204] ss:$8 sps:$4 sm:$0xff]   ;;  %v1416_v46 = vld [vmem:[#allocation5 + $0x280] ss:$8 sps:$4 sm:$0xff]   ;;  %v1422_v52 = vld [vmem:[#allocation7 + $0x60] ss:$8 sps:$4 sm:$0xff]  }
  0x42   :  { %700 = vmatpush1.bf16.msra.mxu0 %v1316_v30  ;;  %v1389_v30 = vld [vmem:[#allocation5 + $0x200] ss:$8 sps:$4 sm:$0xff]   ;;  %v1421_v50 = vld [vmem:[#allocation7 + $0x74] ss:$8 sps:$4 sm:$0xff]   ;;  %v1446_v4 = vld [vmem:[#allocation7 + $0xe0] ss:$8 sps:$4 sm:$0xff]  }
  0x43   :  { %701 = vmatprep.subr.bf16.mxu0 %v1320_v31  ;;  %741 = vmatpush1.bf16.msra.mxu1 %v1319_v32  ;;  %v1394_v31 = vld [vmem:[#allocation5 + $0x2f4] ss:$8 sps:$4 sm:$0xff]   ;;  %v1392_v32 = vld [vmem:[#allocation5 + $0x2f0] ss:$8 sps:$4 sm:$0xff]   ;;  %v1449_v6 = vld [vmem:[#allocation7 + $0xd0] ss:$8 sps:$4 sm:$0xff]  }
  0x44   :  { %742 = vmatprep.subr.bf16.mxu1 %v1323_v33  ;;  %v1397_v33 = vld [vmem:[#allocation5 + $0x2e4] ss:$8 sps:$4 sm:$0xff]   ;;  %v1466_v15 = vld [vmem:[#allocation7 + $0x84] ss:$8 sps:$4 sm:$0xff]   ;;  %v1464_v16 = vld [vmem:[#allocation7 + $0x80] ss:$8 sps:$4 sm:$0xff]  }
  0x46   :  { %702 = vmatpush2.bf16.msra.mxu0 %v1322_v34  ;;  %v1395_v34 = vld [vmem:[#allocation5 + $0x2e0] ss:$8 sps:$4 sm:$0xff]  }
  0x47   :  { %703 = vmatprep.subr.bf16.mxu0 %v1326_v35  ;;  %743 = vmatpush2.bf16.msra.mxu1 %v1325_v36  ;;  %v1400_v35 = vld [vmem:[#allocation5 + $0x2d4] ss:$8 sps:$4 sm:$0xff]   ;;  %v1398_v36 = vld [vmem:[#allocation5 + $0x2d0] ss:$8 sps:$4 sm:$0xff]  }
  0x48   :  { %744 = vmatprep.subr.bf16.mxu1 %v1329_v37  ;;  %v1403_v37 = vld [vmem:[#allocation5 + $0x2c4] ss:$8 sps:$4 sm:$0xff]  }
  0x4a   :  { %704 = vmatpush2.bf16.msra.mxu0 %v1328_v38  ;;  %v1401_v38 = vld [vmem:[#allocation5 + $0x2c0] ss:$8 sps:$4 sm:$0xff]  }
  0x4b   :  { %705 = vmatprep.subr.bf16.mxu0 %v1332_v39  ;;  %745 = vmatpush2.bf16.msra.mxu1 %v1331_v40  ;;  %v1406_v39 = vld [vmem:[#allocation5 + $0x2b4] ss:$8 sps:$4 sm:$0xff]   ;;  %v1404_v40 = vld [vmem:[#allocation5 + $0x2b0] ss:$8 sps:$4 sm:$0xff]  }
  0x4c   :  { %746 = vmatprep.subr.bf16.mxu1 %v1335_v41  ;;  %v1409_v41 = vld [vmem:[#allocation5 + $0x2a4] ss:$8 sps:$4 sm:$0xff]  }
  0x4e   :  { %706 = vmatpush2.bf16.msra.mxu0 %v1334_v42  ;;  %v1407_v42 = vld [vmem:[#allocation5 + $0x2a0] ss:$8 sps:$4 sm:$0xff]  }
  0x4f   :  { %707 = vmatprep.subr.bf16.mxu0 %v1338_v43  ;;  %747 = vmatpush2.bf16.msra.mxu1 %v1337_v44  ;;  %v1412_v43 = vld [vmem:[#allocation5 + $0x294] ss:$8 sps:$4 sm:$0xff]   ;;  %v1410_v44 = vld [vmem:[#allocation5 + $0x290] ss:$8 sps:$4 sm:$0xff]  }
  0x50   :  { %748 = vmatprep.subr.bf16.mxu1 %v1341_v45  ;;  %v1418_v45 = vld [vmem:[#allocation5 + $0x284] ss:$8 sps:$4 sm:$0xff]  }
  0x52   :  { %708 = vmatpush2.bf16.msra.mxu0 %v1340_v47  ;;  %v71_v47 = vld [vmem:[#allocation3 + $0x20] sm:$0xff] }
  0x53   :  { %709 = vmatprep.subr.bf16.mxu0 %v1344_v49  ;;  %749 = vmatpush2.bf16.msra.mxu1 %v1343_v51  ;;  %v78_v48 = vpack.c.bf16 %v71_v47, %v71_v47  ;;  %v1419_v49 = vld [vmem:[#allocation7 + $0x70] ss:$8 sps:$4 sm:$0xff]   ;;  %v1424_v51 = vld [vmem:[#allocation7 + $0x64] ss:$8 sps:$4 sm:$0xff]  }
  0x54   :  { %750 = vmatprep.subr.bf16.mxu1 %v1347_v53  ;;  %v1427_v53 = vld [vmem:[#allocation7 + $0x54] ss:$8 sps:$4 sm:$0xff]  }
  0x56   :  { %710 = vmatpush2.bf16.msra.mxu0 %v1346_v54  ;;  %v1425_v54 = vld [vmem:[#allocation7 + $0x50] ss:$8 sps:$4 sm:$0xff]  }
  0x57   :  { %711 = vmatprep.subr.bf16.mxu0 %v1350_v55  ;;  %751 = vmatpush2.bf16.msra.mxu1 %v1349_v56  ;;  %v1430_v55 = vld [vmem:[#allocation7 + $0x44] ss:$8 sps:$4 sm:$0xff]   ;;  %v1428_v56 = vld [vmem:[#allocation7 + $0x40] ss:$8 sps:$4 sm:$0xff]  }
  0x58   :  { %752 = vmatprep.subr.bf16.mxu1 %v1353_v57  ;;  %v1433_v57 = vld [vmem:[#allocation7 + $0x34] ss:$8 sps:$4 sm:$0xff]  }
  0x5a   :  { %712 = vmatpush2.bf16.msra.mxu0 %v1352_v58  ;;  %v1431_v58 = vld [vmem:[#allocation7 + $0x30] ss:$8 sps:$4 sm:$0xff]  }
  0x5b   :  { %713 = vmatprep.subr.bf16.mxu0 %v1356_v59  ;;  %753 = vmatpush2.bf16.msra.mxu1 %v1355_v60  ;;  %v1436_v59 = vld [vmem:[#allocation7 + $0x24] ss:$8 sps:$4 sm:$0xff]   ;;  %v1434_v60 = vld [vmem:[#allocation7 + $0x20] ss:$8 sps:$4 sm:$0xff]  }
  0x5c   :  { %754 = vmatprep.subr.bf16.mxu1 %v1359_v61  ;;  %v1439_v61 = vld [vmem:[#allocation7 + $0x14] ss:$8 sps:$4 sm:$0xff]  }
  0x5e   :  { %714 = vmatpush2.bf16.msra.mxu0 %v1358_v62  ;;  %v1437_v62 = vld [vmem:[#allocation7 + $0x10] ss:$8 sps:$4 sm:$0xff]  }
  0x5f   :  { %715 = vmatprep.subr.bf16.mxu0 %v1362_v63  ;;  %755 = vmatpush2.bf16.msra.mxu1 %v1361_v0  ;;  %v1442_v63 = vld [vmem:[#allocation7 + $0x4] ss:$8 sps:$4 sm:$0xff]   ;;  %v1440_v0 = vld [vmem:[#allocation7] ss:$8 sps:$4 sm:$0xff]  }
  0x60   :  { %756 = vmatprep.subr.bf16.mxu1 %v1365_v2  ;;  %v1443_v2 = vld [vmem:[#allocation7 + $0xf0] ss:$8 sps:$4 sm:$0xff]  }
  0x62   :  { %716 = vmatpush2.bf16.msra.mxu0 %v1364_v1  ;;  %v1445_v1 = vld [vmem:[#allocation7 + $0xf4] ss:$8 sps:$4 sm:$0xff]  }
  0x63   :  { %767 = vmatprep.subr.bf16.mxu0 %v1370_v5  ;;  %757 = vmatpush2.bf16.msra.mxu1 %v1367_v3  ;;  %v1448_v3 = vld [vmem:[#allocation7 + $0xe4] ss:$8 sps:$4 sm:$0xff]   ;;  %v1451_v5 = vld [vmem:[#allocation7 + $0xd4] ss:$8 sps:$4 sm:$0xff]  }
  0x64   :  { %822 = vmatprep.subr.bf16.mxu1 %v1415_v12  ;;  %v1458_v12 = vld [vmem:[#allocation7 + $0xa0] ss:$8 sps:$4 sm:$0xff]  }
  0x65   :  { %718 = vmatmul.mubr.bf16.vlgmr.msra.gmra.mxu0 %v74_v7  ;;  %v1454_v7 = vld [vmem:[#allocation7 + $0xc4] ss:$8 sps:$4 sm:$0xff]  }
  0x66   :  { %768 = vmatpush1.bf16.msra.mxu0 %v1368_v8  ;;  %759 = vmatmul.mubr.bf16.vlgmr.msra.gmra.mxu1 %v76_v10  ;;  %v1452_v8 = vld [vmem:[#allocation7 + $0xc0] ss:$8 sps:$4 sm:$0xff]   ;;  %v1455_v10 = vld [vmem:[#allocation7 + $0xb0] ss:$8 sps:$4 sm:$0xff]  }
  0x67   :  { %769 = vmatprep.subr.bf16.mxu0 %v1373_v9  ;;  %823 = vmatpush1.bf16.msra.mxu1 %v1413_v11  ;;  %v1457_v9 = vld [vmem:[#allocation7 + $0xb4] ss:$8 sps:$4 sm:$0xff]   ;;  %v1460_v11 = vld [vmem:[#allocation7 + $0xa4] ss:$8 sps:$4 sm:$0xff]  }
  0x68   :  { %840 = vmatprep.mubr.bf16.mxu1 %v1540_v19  ;;  %799 = vmatprep.mubr.bf16.mxu0 %v79_v17 }
  0x69   :  { %1057 = vmatprep.subr.bf16.mxu1 %v1421_v50 }
  0x6a   :  { %770 = vmatpush1.bf16.msra.mxu0 %v1371_v13  ;;  %v1463_v13 = vld [vmem:[#allocation7 + $0x94] ss:$8 sps:$4 sm:$0xff]  }
  0x6b   :  { %771 = vmatprep.subr.bf16.mxu0 %v1376_v14  ;;  %v1461_v14 = vld [vmem:[#allocation7 + $0x90] ss:$8 sps:$4 sm:$0xff]  }
  0x6e   :  { %772 = vmatpush1.bf16.msra.mxu0 %v1374_v18  ;;  %1232 = vmatmul.mubr.msk.bf16.vlgmr.msra.gmra.mxu1 %vm681_vm0, %v80_v21 }
  0x6f   :  { %773 = vmatprep.subr.bf16.mxu0 %v1379_v20  ;;  %1058 = vmatpush1.bf16.msra.mxu1 %v1419_v49 }
  0x70   :  { %1059 = vmatprep.subr.bf16.mxu1 %v1424_v51 }
  0x72   :  { %774 = vmatpush1.bf16.msra.mxu0 %v1377_v22 }
  0x73   :  { %775 = vmatprep.subr.bf16.mxu0 %v1382_v23  ;;  %1060 = vmatpush1.bf16.msra.mxu1 %v1422_v52  ;;  %v885_v52 = vld [vmem:[%s1609_s4] sm:$0x3] }
  0x74   :  { %1061 = vmatprep.subr.bf16.mxu1 %v1427_v53 }
  0x76   :  { %776 = vmatpush1.bf16.msra.mxu0 %v1380_v24 }
  0x77   :  { %777 = vmatprep.subr.bf16.mxu0 %v1385_v25  ;;  %1062 = vmatpush1.bf16.msra.mxu1 %v1425_v54 }
  0x78   :  { %1063 = vmatprep.subr.bf16.mxu1 %v1430_v55 }
  0x7a   :  { %778 = vmatpush1.bf16.msra.mxu0 %v1383_v26 }
  0x7b   :  { %779 = vmatprep.subr.bf16.mxu0 %v1388_v27  ;;  %1064 = vmatpush1.bf16.msra.mxu1 %v1428_v56  ;;  %v1100_v56 = vld [vmem:[%s1610_s5] sm:$0x3] }
  0x7c   :  { %1065 = vmatprep.subr.bf16.mxu1 %v1433_v57 }
  0x7e   :  { %780 = vmatpush1.bf16.msra.mxu0 %v1386_v28 }
  0x7f   :  { %781 = vmatprep.subr.bf16.mxu0 %v1391_v29  ;;  %1066 = vmatpush1.bf16.msra.mxu1 %v1431_v58  ;;  %v181_v29 = vlaneseq }
  0x80   :  { %1067 = vmatprep.subr.bf16.mxu1 %v1436_v59 }
  0x82   :  { %782 = vmatpush1.bf16.msra.mxu0 %v1389_v30  ;;  %v182_v30 = vshrl.u32 %v181_v29, 7 }
  0x83   :  { %783 = vmatprep.subr.bf16.mxu0 %v1394_v31  ;;  %1068 = vmatpush1.bf16.msra.mxu1 %v1434_v60 }
  0x84   :  { %1069 = vmatprep.subr.bf16.mxu1 %v1439_v61  ;;  %v183_v31 = vsub.s32 0, %v182_v30 }
  0x86   :  { %784 = vmatpush2.bf16.msra.mxu0 %v1392_v32  ;;  %v179_v32 = vld [vmem:[%s1607_s2] sm:$0x3]  ;;  %v890_v53 = vrot.slane %v885_v52, %v183_v31  ;;  %v1105_v61 = vrot.slane %v1100_v56, %v183_v31 }
  0x87   :  { %785 = vmatprep.subr.bf16.mxu0 %v1397_v33  ;;  %1070 = vmatpush1.bf16.msra.mxu1 %v1437_v62  ;;  %v187_v33 = vsub.s32 1, %v182_v30 }
  0x88   :  { %1071 = vmatprep.subr.bf16.mxu1 %v1442_v63 }
  0x89   :  { %v894_v54 = vrot.slane %v885_v52, %v187_v33  ;;  %v1109_v62 = vrot.slane %v1100_v56, %v187_v33 }
  0x8a   :  { %786 = vmatpush2.bf16.msra.mxu0 %v1395_v34  ;;  %v184_v34 = vrot.slane %v179_v32, %v183_v31 }
  0x8b   :  { %787 = vmatprep.subr.bf16.mxu0 %v1400_v35  ;;  %1072 = vmatpush1.bf16.msra.mxu1 %v1440_v0  ;;  %v188_v35 = vrot.slane %v179_v32, %v187_v33 }
  0x8c   :  { %1073 = vmatprep.subr.bf16.mxu1 %v1445_v1 }
  0x8e   :  { %788 = vmatpush2.bf16.msra.mxu0 %v1398_v36 }
  0x8f   :  { %789 = vmatprep.subr.bf16.mxu0 %v1403_v37  ;;  %1074 = vmatpush2.bf16.msra.mxu1 %v1443_v2 }
  0x90   :  { %1075 = vmatprep.subr.bf16.mxu1 %v1448_v3 }
  0x92   :  { %790 = vmatpush2.bf16.msra.mxu0 %v1401_v38 }
  0x93   :  { %791 = vmatprep.subr.bf16.mxu0 %v1406_v39  ;;  %1076 = vmatpush2.bf16.msra.mxu1 %v1446_v4 }
  0x94   :  { %1077 = vmatprep.subr.bf16.mxu1 %v1451_v5  ;;  %v1118_v5 = vstv %s1611_s6 }
  0x96   :  { %792 = vmatpush2.bf16.msra.mxu0 %v1404_v40 }
  0x97   :  { %793 = vmatprep.subr.bf16.mxu0 %v1409_v41  ;;  %1078 = vmatpush2.bf16.msra.mxu1 %v1449_v6 }
  0x98   :  { %1079 = vmatprep.subr.bf16.mxu1 %v1454_v7 }
  0x9a   :  { %794 = vmatpush2.bf16.msra.mxu0 %v1407_v42 }
  0x9b   :  { %795 = vmatprep.subr.bf16.mxu0 %v1412_v43  ;;  %1080 = vmatpush2.bf16.msra.mxu1 %v1452_v8 }
  0x9c   :  { %1081 = vmatprep.subr.bf16.mxu1 %v1457_v9 }
  0x9e   :  { %796 = vmatpush2.bf16.msra.mxu0 %v1410_v44 }
  0x9f   :  { %797 = vmatprep.subr.bf16.mxu0 %v1418_v45  ;;  %1082 = vmatpush2.bf16.msra.mxu1 %v1455_v10 }
  0xa0   :  { %1083 = vmatprep.subr.bf16.mxu1 %v1460_v11 }
  0xa2   :  { %798 = vmatpush2.bf16.msra.mxu0 %v1416_v46 }
  0xa3   :  { %1084 = vmatpush2.bf16.msra.mxu1 %v1458_v12 }
  0xa4   :  { %1085 = vmatprep.subr.bf16.mxu1 %v1463_v13 }
  0xa5   :  { %800 = vmatmul.mubr.bf16.vlgmr.msra.gmra.mxu0 %v78_v48 }
  0xa7   :  { %1086 = vmatpush2.bf16.msra.mxu1 %v1461_v14 }
  0xa8   :  { %1087 = vmatprep.subr.bf16.mxu1 %v1466_v15 }
  0xab   :  { %1088 = vmatpush2.bf16.msra.mxu1 %v1464_v16 }
 0x125   :  { %v719_v17 = vpop.f32.mrf.mxu0 }
 0x126   :  { %v760_v19 = vpop.f32.mrf.mxu1  ;;  %v720_v36 = vadd.f32 %v719_v17, %v184_v34 }
 0x127   :  { %v721_v18 = vpop.f32.mrf.mxu0 }
 0x128   :  { %v762_v21 = vpop.f32.mrf.mxu1  ;;  %v722_v37 = vadd.f32 %v721_v18, %v188_v35  ;;  %v761_v38 = vadd.f32 %v760_v19, %v720_v36 }
 0x129   :  { %v723_v20 = vpop.f32.mrf.mxu0 }
 0x12a   :  { %v764_v23 = vpop.f32.mrf.mxu1  ;;  %v763_v40 = vadd.f32 %v762_v21, %v722_v37 }
 0x12b   :  { %v724_v22 = vpop.f32.mrf.mxu0 }
 0x12c   :  { %v765_v24 = vpop.f32.mrf.mxu1 }
 0x12e   :  { %v842_v25 = vpop.f32.mrf.mxu1 }
 0x130   :  { %v844_v26 = vpop.f32.mrf.mxu1 }
 0x132   :  { %v846_v27 = vpop.f32.mrf.mxu1 }
 0x134   :  { %v847_v28 = vpop.f32.mrf.mxu1 }
 0x165   :  { %v801_v39 = vpop.f32.mrf.mxu0 }
 0x166   :  { %v802_v41 = vadd.f32 %v801_v39, %v761_v38 }
 0x167   :  { %v803_v42 = vpop.f32.mrf.mxu0 }
 0x168   :  { %v843_v43 = vadd.f32 %v842_v25, %v802_v41  ;;  %v804_v44 = vadd.f32 %v803_v42, %v763_v40 }
 0x169   :  { %v805_v45 = vpop.f32.mrf.mxu0 }
 0x16a   :  { %v845_v46 = vadd.f32 %v844_v26, %v804_v44  ;;  %v849_v47 = vmax.f32 %v843_v43, 0.0 }
 0x16b   :  { %v806_v48 = vpop.f32.mrf.mxu0 }
 0x16c   :  { %v850_v49 = vmax.f32 %v845_v46, 0.0  ;;  %v851_v51 = vpack.c.bf16 %v849_v47, %v849_v47 }
 0x16e   :  { %v852_v50 = vpack.c.bf16 %v850_v49, %v850_v49 }
 0x170   :  { %1089 = vmatprep.mubr.bf16.mxu1 %v852_v50 }
 0x171   :  { %1090 = vmatmul.mubr.bf16.vlgmr.msra.gmra.mxu1 %v851_v51 }
 0x231   :  { %v1091_v55 = vpop.f32.mrf.mxu1 }
 0x232   :  { %v1092_v57 = vadd.f32 %v1091_v55, %v890_v53 }
 0x233   :  { %v1093_v58 = vpop.f32.mrf.mxu1 }
 0x234   :  { %v1098_v59 = vmax.f32 %v1092_v57, 0.0  ;;  %v1094_v60 = vadd.f32 %v1093_v58, %v894_v54 }
 0x235   :  { %v1095_v63 = vpop.f32.mrf.mxu1 }
 0x236   :  { %v1099_v0 = vmax.f32 %v1094_v60, 0.0  ;;  %v1112_v2 = vmul.f32 %v1105_v61, %v1098_v59 }
 0x237   :  { %v1096_v1 = vpop.f32.mrf.mxu1 }
 0x238   :  { %v1113_v3 = vmul.f32 %v1109_v62, %v1099_v0 }
 0x23a   :  { %v1114_v4 = vadd.f32 %v1113_v3, %v1112_v2 }
 0x23c   :  { %1115 = vadd.xlane.f32.xlu0 %v1114_v4 }
 0x2c5   :  { %v1116_v6 = vpop.xlane.xlu0 %1115 }
 0x2c6   :  { %v1119_v7 = vadd.f32 %v1118_v5, %v1116_v6 }
 0x2c8   :  { %v1265_v8 = vmul.f32 -1.442695, %v1119_v7 }
 0x2ca   :  { %1467 = vpow2.f32 %v1265_v8 }
 0x2d7   :  { %v1468_v9 = vpop.eup %1467 }
 0x2d8   :  { %v1123_v10 = vadd.f32 1.0, %v1468_v9 }
 0x2da   :  { %1469 = vrcp.f32 %v1123_v10 }
 0x2e7   :  { %v1470_v11 = vpop.eup %1469 }
 0x2e8   :  { %1127 = vst.msk [vmem:[%s1612_s7] sm:$0xff] %vm1126_vm1, %v1470_v11 }
 0x2e9   :  { %1132 = vsyncpa [#allocation4], 1 }
 0x2ea   :  { %1133 = vsyncpa [#allocation6], 1 }

</bundles_post_ra>
